<compile_context>
chip_gen: v6e
topology: v6e:2x2x1
jax: 0.10.0
libtpu: 0.0.40
codegen_flags: <defaults>
</compile_context>

<pallas_src>
import jax
import jax.numpy as jnp
from jax.experimental import pallas as pl
from jax.experimental.pallas import tpu as pltpu

F_PAD = 128                 # lane-padded feature / class width
G_SUB = 8                   # sublane-padded graph count
NEG_BIG = -1e30             # "minus infinity" that stays finite in f32
VMEM_LIMIT = 32 * 1024 * 1024


def round_up(x, m):
    return ((x + m - 1) // m) * m


def pick_tile(n_pad, target):
    """Largest multiple of 128 <= target that divides n_pad."""
    t = min(n_pad, target)
    t -= t % 128
    t = max(t, 128)
    while n_pad % t:
        t -= 128
    return t


# ----------------------------------------------------------------------------
# Per-layer kernel: tiled (A_hat @ X) @ W + b (+ SiLU)
# ----------------------------------------------------------------------------
def _make_layer_kernel(apply_silu):
    def kernel(adj_ref, h_ref, w_ref, b_ref, out_ref, acc_ref):
        k = pl.program_id(1)

        @pl.when(k == 0)
        def _():
            acc_ref[...] = jnp.zeros_like(acc_ref)

        # aggregate: (TM, TK) bf16 @ (TK, 128) bf16 -> f32 accumulation
        acc_ref[...] += jnp.dot(adj_ref[...],
                                h_ref[...].astype(jnp.bfloat16),
                                preferred_element_type=jnp.float32)

        @pl.when(k == pl.num_programs(1) - 1)
        def _():
            h_new = jnp.dot(acc_ref[...], w_ref[...],
                            preferred_element_type=jnp.float32)
            h_new = h_new + b_ref[0:1, :]
            if apply_silu:
                h_new = h_new * jax.nn.sigmoid(h_new)      # SiLU: x * sigmoid(x)
            out_ref[...] = h_new.astype(out_ref.dtype)

    return kernel


def gcn_layer(adj_bf16, h, w, b, *, apply_silu, tm, tk):
    n_pad, f_pad = h.shape
    grid = (n_pad // tm, n_pad // tk)          # reduction (k) axis last
    return pl.pallas_call(
        _make_layer_kernel(apply_silu),
        out_shape=jax.ShapeDtypeStruct((n_pad, f_pad), jnp.float32),
        grid_spec=pltpu.PrefetchScalarGridSpec(
            num_scalar_prefetch=0,
            grid=grid,
            in_specs=[
                pl.BlockSpec((tm, tk), lambda i, k: (i, k)),        # A_hat tile
                pl.BlockSpec((tk, f_pad), lambda i, k: (k, 0)),     # X K-tile
                pl.BlockSpec((f_pad, f_pad), lambda i, k: (0, 0)),  # W resident
                pl.BlockSpec((G_SUB, f_pad), lambda i, k: (0, 0)),  # bias resident
            ],
            out_specs=pl.BlockSpec((tm, f_pad), lambda i, k: (i, 0)),
            scratch_shapes=[pltpu.VMEM((tm, f_pad), jnp.float32)],
        ),
        compiler_params=pltpu.CompilerParams(
            dimension_semantics=("parallel", "arbitrary"),
            vmem_limit_bytes=VMEM_LIMIT),
    )(adj_bf16, h, w, b)


# ----------------------------------------------------------------------------
# Pooling kernel: segmented per-graph max/mean pooling + fused log_softmax
# ----------------------------------------------------------------------------
def _make_pool_kernel(g_pad, num_classes, tn, f_pad):
    def kernel(starts_ref, counts_ref, h_ref, out_ref, max_acc, sum_acc):
        t = pl.program_id(0)

        @pl.when(t == 0)
        def _():
            max_acc[...] = jnp.full_like(max_acc, NEG_BIG)
            sum_acc[...] = jnp.zeros_like(sum_acc)

        h = h_ref[...]                                            # [TN, 128] f32
        node_id = t * tn + jax.lax.broadcasted_iota(jnp.int32, (tn, f_pad), 0)

        # Segmented per-graph reductions (contiguous PyG batch layout),
        # unrolled over the small padded graph count — pure 2-D [TN,128] work,
        # no 3-D temporaries, no mask tensor, no cross-lane relayout.
        for g in range(g_pad):
            s = starts_ref[g]
            c = counts_ref[g]
            in_g = (node_id >= s) & (node_id < s + c)
            tile_max = jnp.max(jnp.where(in_g, h, NEG_BIG),
                               axis=0, keepdims=True)             # [1, 128]
            tile_sum = jnp.sum(jnp.where(in_g, h, 0.0),
                               axis=0, keepdims=True)             # [1, 128]
            inv_c = 1.0 / jnp.maximum(c, 1).astype(jnp.float32)
            max_acc[g:g + 1, :] = jnp.maximum(max_acc[g:g + 1, :], tile_max)
            sum_acc[g:g + 1, :] = sum_acc[g:g + 1, :] + tile_sum * inv_c

        @pl.when(t == pl.num_programs(0) - 1)
        def _():
            lane = jax.lax.broadcasted_iota(jnp.int32, (g_pad, f_pad), 1)
            valid = lane < num_classes
            mp = jnp.where(valid, max_acc[...], NEG_BIG)   # global max pool
            ap = jnp.where(valid, sum_acc[...], NEG_BIG)   # global mean pool
            row_max = jnp.maximum(jnp.max(mp, axis=1, keepdims=True),
                                  jnp.max(ap, axis=1, keepdims=True))
            sum_exp = (jnp.sum(jnp.exp(mp - row_max), axis=1, keepdims=True)
                       + jnp.sum(jnp.exp(ap - row_max), axis=1, keepdims=True))
            lse = row_max + jnp.log(sum_exp)
            # lane-dense, 128-aligned full-width stores
            out_ref[:, :f_pad] = (mp - lse).astype(out_ref.dtype)
            out_ref[:, f_pad:] = (ap - lse).astype(out_ref.dtype)

    return kernel


def pool_log_softmax(starts, counts, h, *, g_pad, num_classes, tn):
    n_pad, f_pad = h.shape
    return pl.pallas_call(
        _make_pool_kernel(g_pad, num_classes, tn, f_pad),
        out_shape=jax.ShapeDtypeStruct((g_pad, 2 * f_pad), jnp.float32),
        grid_spec=pltpu.PrefetchScalarGridSpec(
            num_scalar_prefetch=2,                     # starts, counts -> SMEM
            grid=(n_pad // tn,),
            in_specs=[pl.BlockSpec((tn, f_pad), lambda t, s, c: (t, 0))],
            out_specs=pl.BlockSpec((g_pad, 2 * f_pad), lambda t, s, c: (0, 0)),
            scratch_shapes=[pltpu.VMEM((g_pad, f_pad), jnp.float32),
                            pltpu.VMEM((g_pad, f_pad), jnp.float32)],
        ),
        compiler_params=pltpu.CompilerParams(
            dimension_semantics=("arbitrary",),        # accumulators carried
            vmem_limit_bytes=VMEM_LIMIT),
    )(starts, counts, h)


# ----------------------------------------------------------------------------
# Forward wrapper
# ----------------------------------------------------------------------------
def gcn_forward(x_p, adj_bf16, starts, counts, params_p, num_graphs, num_classes):
    n_pad, f_pad = x_p.shape
    g_pad = starts.shape[0]
    num_layers = len(params_p)

    tm = pick_tile(n_pad, 512)      # adjacency row tile (>=256 keeps MXU fed)
    tk = pick_tile(n_pad, 1024)     # adjacency K (neighbor) tile
    tn = pick_tile(n_pad, 1024)     # pooling node tile

    h = x_p
    for li, (w, b) in enumerate(params_p):
        h = gcn_layer(adj_bf16, h, w, b,
                      apply_silu=(li < num_layers - 1), tm=tm, tk=tk)

    out_padded = pool_log_softmax(starts, counts, h,
                                  g_pad=g_pad, num_classes=num_classes, tn=tn)

    # slice the real [G, 2*num_classes] result back out of the padded slab
    return jnp.concatenate(
        [out_padded[:num_graphs, :num_classes],
         out_padded[:num_graphs, f_pad:f_pad + num_classes]], axis=1)


# ----------------------------------------------------------------------------
# Plain-JAX glue: graph preprocessing, parameter init, reference
# ----------------------------------------------------------------------------
def build_normalized_adjacency(edge_index, num_nodes):
    """Dense A_hat = D^-1/2 (A + I) D^-1/2 (GCNConv's gcn_norm)."""
    a = jnp.zeros((num_nodes, num_nodes), jnp.float32)
    a = a.at[edge_index[0], edge_index[1]].set(1.0)
    a = a + jnp.eye(num_nodes, dtype=jnp.float32)          # self loops
    deg = jnp.sum(a, axis=1)
    dinv = jnp.where(deg > 0, 1.0 / jnp.sqrt(deg), 0.0)
    return a * dinv[:, None] * dinv[None, :]


def glorot_uniform(key, fan_in, fan_out):
    limit = jnp.sqrt(6.0 / (fan_in + fan_out))
    return jax.random.uniform(key, (fan_in, fan_out), jnp.float32,
                              minval=-limit, maxval=limit)


def init_gcn_params(key, num_features, width, num_classes):
    dims = [num_features] + list(width) + [num_classes]
    params = []
    for i in range(len(dims) - 1):
        key, sub = jax.random.split(key)
        w = glorot_uniform(sub, dims[i], dims[i + 1])      # xavier/glorot uniform
        b = jnp.zeros((1, dims[i + 1]), jnp.float32)       # GCNConv bias init = 0
        params.append((w, b))
    return params


def gcn_reference(x, adj, batch, params, num_graphs):
    """Plain-JAX reference mirroring the kernel's precision policy
    (bf16 adjacency-matmul operands, f32 accumulation), unpadded shapes.
    NOTE: diverges from a pure-f32 PyTorch GCN by ~1e-3-level bf16 rounding."""
    adj_bf = adj.astype(jnp.bfloat16)
    h = x
    nl = len(params)
    for li, (w, b) in enumerate(params):
        agg = jnp.dot(adj_bf, h.astype(jnp.bfloat16),
                      preferred_element_type=jnp.float32)
        h = jnp.dot(agg, w, preferred_element_type=jnp.float32) + b
        if li < nl - 1:
            h = h * jax.nn.sigmoid(h)
    onehot = (batch[:, None] == jnp.arange(num_graphs)[None, :]).astype(jnp.float32)
    counts = jnp.sum(onehot, axis=0)
    mean_pool = (onehot / counts[None, :]).T @ h
    max_pool = jnp.stack(
        [jnp.max(jnp.where(onehot[:, g:g + 1] > 0, h, -jnp.inf), axis=0)
         for g in range(num_graphs)], axis=0)
    cat = jnp.concatenate([max_pool, mean_pool], axis=1)
    return jax.nn.log_softmax(cat, axis=1)


# ----------------------------------------------------------------------------
# Main
# ----------------------------------------------------------------------------
if __name__ == "__main__":
    key = jax.random.PRNGKey(0)

    num_nodes = 16          # 2 graphs x 8 nodes (contiguous PyG-style batch)
    num_features = 8
    width = [32, 16]
    num_classes = 4
    num_graphs = 2
    nodes_per_graph = num_nodes // num_graphs

    # node features
    key, kx = jax.random.split(key)
    x = jax.random.normal(kx, (num_nodes, num_features), jnp.float32)

    # edge_index: an undirected chain inside each graph (no self loops)
    src, dst = [], []
    for g in range(num_graphs):
        base = g * nodes_per_graph
        for i in range(nodes_per_graph - 1):
            src += [base + i, base + i + 1]
            dst += [base + i + 1, base + i]
    edge_index = jnp.array([src, dst], dtype=jnp.int32)

    # contiguous batch assignment (standard torch_geometric batching)
    batch = jnp.repeat(jnp.arange(num_graphs, dtype=jnp.int32), nodes_per_graph)

    # dense normalized adjacency (unpadded)
    adj = build_normalized_adjacency(edge_index, num_nodes)          # [N, N]

    # parameters (deterministic)
    key, kp = jax.random.split(key)
    params = init_gcn_params(kp, num_features, width, num_classes)

    # ---- lane/sublane-dense zero padding --------------------------------
    n_pad = round_up(num_nodes, 128)
    g_pad = round_up(num_graphs, G_SUB)

    x_p = jnp.zeros((n_pad, F_PAD), jnp.float32).at[:num_nodes, :num_features].set(x)

    adj_p = jnp.zeros((n_pad, n_pad), jnp.float32).at[:num_nodes, :num_nodes].set(adj)
    adj_bf16 = adj_p.astype(jnp.bfloat16)            # O(N^2) operand -> bf16

    # per-graph contiguous node ranges (scalar-prefetched into SMEM)
    onehot = (batch[:, None] == jnp.arange(num_graphs)[None, :])
    counts_real = jnp.sum(onehot, axis=0).astype(jnp.int32)
    starts_real = jnp.argmax(onehot, axis=0).astype(jnp.int32)
    starts = jnp.zeros((g_pad,), jnp.int32).at[:num_graphs].set(starts_real)
    counts = jnp.zeros((g_pad,), jnp.int32).at[:num_graphs].set(counts_real)

    params_p = []
    for w, b in params:
        wp = jnp.zeros((F_PAD, F_PAD), jnp.float32).at[:w.shape[0],
                                                       :w.shape[1]].set(w)
        # bias padded to a full 8-sublane tile (unmasked load in the kernel)
        bp = jnp.zeros((G_SUB, F_PAD), jnp.float32).at[:, :b.shape[1]].set(
            jnp.broadcast_to(b, (G_SUB, b.shape[1])))
        params_p.append((wp, bp))

    # ---- run the Pallas kernels ------------------------------------------
    out = gcn_forward(x_p, adj_bf16, starts, counts, params_p,
                      num_graphs, num_classes)
    out = jax.block_until_ready(out)

    # ---- checks ----------------------------------------------------------
    assert out.shape == (num_graphs, 2 * num_classes)
    # rows of log_softmax must sum to 1 after exp
    assert jnp.allclose(jnp.sum(jnp.exp(out), axis=1), 1.0, atol=1e-4)
    # match the plain-JAX reference (same precision policy)
    ref = gcn_reference(x, adj, batch, params, num_graphs)
    assert jnp.allclose(out, ref, atol=1e-3, rtol=1e-3)

    print("KERNEL_OK")
</pallas_src>

<mosaic_0001>
module attributes {stable_mosaic.version = 11 : i64} {
  func.func @kernel(%arg0: i32, %arg1: i32, %arg2: memref<128x128xbf16, #tpu.memory_space<vmem>>, %arg3: memref<128x128xf32, #tpu.memory_space<vmem>>, %arg4: memref<128x128xf32, #tpu.memory_space<vmem>>, %arg5: memref<8x128xf32, #tpu.memory_space<vmem>>, %arg6: memref<128x128xf32, #tpu.memory_space<vmem>>, %arg7: memref<128x128xf32, #tpu.memory_space<vmem>>) attributes {dimension_semantics = [#tpu.dimension_semantics<parallel>, #tpu.dimension_semantics<arbitrary>], iteration_bounds = array<i64: 1, 1>, scalar_prefetch = 0 : i64, scratch_operands = 1 : i64, tpu.core_type = #tpu.core_type<tc>, window_params = [{transform_indices = @transform_0, window_bounds = array<i64: 128, 128>}, {transform_indices = @transform_1, window_bounds = array<i64: 128, 128>}, {pipeline_mode = #tpu.pipeline_mode<synchronous>, transform_indices = @transform_2, window_bounds = array<i64: 128, 128>}, {pipeline_mode = #tpu.pipeline_mode<synchronous>, transform_indices = @transform_3, window_bounds = array<i64: 8, 128>}, {transform_indices = @transform_4, window_bounds = array<i64: 128, 128>}]} {
    %c0_i32 = arith.constant 0 : i32
    %0 = arith.cmpi eq, %arg1, %c0_i32 : i32
    %1 = arith.extui %0 : i1 to i32
    %c0_i32_0 = arith.constant 0 : i32
    %2 = arith.cmpi ne, %1, %c0_i32_0 : i32
    scf.if %2 {
      %cst_10 = arith.constant 0.000000e+00 : f32
      %13 = vector.broadcast %cst_10 : f32 to vector<128x128xf32>
      %c0_11 = arith.constant 0 : index
      %c0_12 = arith.constant 0 : index
      %14 = vector.load %arg7[%c0_11, %c0_12] : memref<128x128xf32, #tpu.memory_space<vmem>>, vector<128x128xf32>
      tpu.vector_store %arg7[%c0_11, %c0_12], %13 {strides = array<i32>} : memref<128x128xf32, #tpu.memory_space<vmem>>, vector<128x128xf32>,
    } else {
    }
    %c0 = arith.constant 0 : index
    %c0_1 = arith.constant 0 : index
    %3 = vector.load %arg7[%c0, %c0_1] : memref<128x128xf32, #tpu.memory_space<vmem>>, vector<128x128xf32>
    %c0_2 = arith.constant 0 : index
    %c0_3 = arith.constant 0 : index
    %4 = vector.load %arg2[%c0_2, %c0_3] : memref<128x128xbf16, #tpu.memory_space<vmem>>, vector<128x128xbf16>
    %c0_4 = arith.constant 0 : index
    %c0_5 = arith.constant 0 : index
    %5 = vector.load %arg3[%c0_4, %c0_5] : memref<128x128xf32, #tpu.memory_space<vmem>>, vector<128x128xf32>
    %6 = arith.truncf %5 : vector<128x128xf32> to vector<128x128xbf16>
    %cst = arith.constant dense<0.000000e+00> : vector<128x128xf32>
    %7 = tpu.matmul %4, %6, %cst {dimension_numbers = #tpu.dot_dimension_numbers<[1], [0], [0], [1], [0, 0, 1, 1], [], []>} : vector<128x128xbf16>, vector<128x128xbf16>, vector<128x128xf32> -> vector<128x128xf32>
    %8 = arith.addf %3, %7 : vector<128x128xf32>
    %c0_6 = arith.constant 0 : index
    %c0_7 = arith.constant 0 : index
    %9 = vector.load %arg7[%c0_6, %c0_7] : memref<128x128xf32, #tpu.memory_space<vmem>>, vector<128x128xf32>
    tpu.vector_store %arg7[%c0_6, %c0_7], %8 {strides = array<i32>} : memref<128x128xf32, #tpu.memory_space<vmem>>, vector<128x128xf32>,
    %c0_i32_8 = arith.constant 0 : i32
    %10 = arith.cmpi eq, %arg1, %c0_i32_8 : i32
    %11 = arith.extui %10 : i1 to i32
    %c0_i32_9 = arith.constant 0 : i32
    %12 = arith.cmpi ne, %11, %c0_i32_9 : i32
    scf.if %12 {
      %c0_10 = arith.constant 0 : index
      %c0_11 = arith.constant 0 : index
      %13 = vector.load %arg7[%c0_10, %c0_11] : memref<128x128xf32, #tpu.memory_space<vmem>>, vector<128x128xf32>
      %c0_12 = arith.constant 0 : index
      %c0_13 = arith.constant 0 : index
      %14 = vector.load %arg4[%c0_12, %c0_13] : memref<128x128xf32, #tpu.memory_space<vmem>>, vector<128x128xf32>
      %cst_14 = arith.constant dense<0.000000e+00> : vector<128x128xf32>
      %15 = tpu.matmul %13, %14, %cst_14 {dimension_numbers = #tpu.dot_dimension_numbers<[1], [0], [0], [1], [0, 0, 1, 1], [], []>} : vector<128x128xf32>, vector<128x128xf32>, vector<128x128xf32> -> vector<128x128xf32>
      %c0_15 = arith.constant 0 : index
      %c0_16 = arith.constant 0 : index
      %16 = vector.load %arg5[%c0_15, %c0_16] : memref<8x128xf32, #tpu.memory_space<vmem>>, vector<1x128xf32>
      %17 = vector.broadcast %16 : vector<1x128xf32> to vector<128x128xf32>
      %18 = arith.addf %15, %17 : vector<128x128xf32>
      %19 = arith.negf %18 : vector<128x128xf32>
      %20 = math.exp %19 : vector<128x128xf32>
      %cst_17 = arith.constant 1.000000e+00 : f32
      %21 = vector.broadcast %cst_17 : f32 to vector<128x128xf32>
      %22 = arith.addf %21, %20 : vector<128x128xf32>
      %23 = arith.divf %21, %22 : vector<128x128xf32>
      %24 = arith.mulf %18, %23 : vector<128x128xf32>
      %c0_18 = arith.constant 0 : index
      %c0_19 = arith.constant 0 : index
      %25 = vector.load %arg6[%c0_18, %c0_19] : memref<128x128xf32, #tpu.memory_space<vmem>>, vector<128x128xf32>
      tpu.vector_store %arg6[%c0_18, %c0_19], %24 {strides = array<i32>} : memref<128x128xf32, #tpu.memory_space<vmem>>, vector<128x128xf32>,
    } else {
    }
    return
  }
  func.func @transform_0(%arg0: i32, %arg1: i32) -> (i32, i32) {
    %c0_i32 = arith.constant 0 : i32
    return %arg0, %arg1 : i32, i32
  }
  func.func @transform_1(%arg0: i32, %arg1: i32) -> (i32, i32) {
    %c0_i32 = arith.constant 0 : i32
    %c0_i32_0 = arith.constant 0 : i32
    return %arg1, %c0_i32 : i32, i32
  }
  func.func @transform_2(%arg0: i32, %arg1: i32) -> (i32, i32) {
    %c0_i32 = arith.constant 0 : i32
    %c0_i32_0 = arith.constant 0 : i32
    %c0_i32_1 = arith.constant 0 : i32
    return %c0_i32, %c0_i32_0 : i32, i32
  }
  func.func @transform_3(%arg0: i32, %arg1: i32) -> (i32, i32) {
    %c0_i32 = arith.constant 0 : i32
    %c0_i32_0 = arith.constant 0 : i32
    %c0_i32_1 = arith.constant 0 : i32
    return %c0_i32, %c0_i32_0 : i32, i32
  }
  func.func @transform_4(%arg0: i32, %arg1: i32) -> (i32, i32) {
    %c0_i32 = arith.constant 0 : i32
    %c0_i32_0 = arith.constant 0 : i32
    return %arg0, %c0_i32 : i32, i32
  }
}

</mosaic_0001>

<bundles_post_ra>
// kernel: tpu_custom_call.1
= control target key start
LH: loop header
LB: loop body
LE: loop exit
PB: predicated region body
PF: predicated region fallthrough
CT: control target
= control target key end

     0   :  { %9 = vsyncpa [#allocation4], 0  ;;  %s1147_s0 = inlined_call_operand.hbm [shape: bf16[128,128], index: 0, kind: input, shape index: {}]   ;;  %s1148_s1 = inlined_call_operand.hbm [shape: f32[128,128], index: 1, kind: input, shape index: {}]   ;;  %s1149_s2 = inlined_call_operand.hbm [shape: f32[128,128], index: 2, kind: input, shape index: {}]   ;;  %s1150_s3 = inlined_call_operand.hbm [shape: f32[8,128], index: 3, kind: input, shape index: {}]   ;;  %s1151_s4 = inlined_call_operand.hbm [shape: f32[128,128], index: 4, kind: output, shape index: {}]  }
   0x1   :  { %10 = vsyncpa [#allocation7], 0 }
   0x2   :  { %11 = vsyncpa [#allocation10], 0 }
   0x3   :  { %12 = vsyncpa [#allocation5], 0  ;;  %s1007_s15 = smov [#allocation6]  }
   0x4   :  { %s30_s16 = sshll.u32 %s1007_s15, 4  ;;  %s31_s16 = int_to_ptr.vmem [resolvable:$true] %s30_s16 }
   0x5   :  { %s907_s17 = scalar_lea.vmem %s31_s16, 2048  ;;  %p912_p1 = scmp.lt.s32.totalorder %s31_s16, %s31_s16 }
   0x6   :  { %p908_p0 = scmp.ne.s32.totalorder %s31_s16, %s907_s17  ;;  %p913_p2 = scmp.lt.s32.totalorder %s907_s17, %s907_s17 }
   0x8   :  { %p914_p3 = por %p913_p2, %p912_p1 }
   0xa   :  { %p915_p4 = pnand %p914_p3, %p908_p0 }
   0xc   :  { %918 = shalt.err (!%p915_p4)
}
   0xd   :  { %s1008_s18 = smov 128   ;;  %s1009_s19 = smov 8  }
   0xe   :  { %36 = dma.hbm_to_vmem [thread:$0]  %s1148_s1, 2048, %s31_s16, [#allocation7], %s1008_s18, %s1008_s18, %s1009_s19  }
   0xf   :  { %s1010_s22 = smov [#allocation3]  }
  0x10   :  { %s18_s23 = sshll.u32 %s1010_s22, 4  ;;  %s19_s23 = int_to_ptr.vmem [resolvable:$true] %s18_s23 }
  0x11   :  { %s927_s24 = scalar_lea.vmem %s19_s23, 1024  ;;  %p932_p6 = scmp.lt.s32.totalorder %s19_s23, %s19_s23 }
  0x12   :  { %p928_p5 = scmp.ne.s32.totalorder %s19_s23, %s927_s24  ;;  %p933_p7 = scmp.lt.s32.totalorder %s927_s24, %s927_s24 }
  0x14   :  { %p934_p8 = por %p933_p7, %p932_p6 }
  0x16   :  { %p935_p9 = pnand %p934_p8, %p928_p5 }
  0x18   :  { %938 = shalt.err (!%p935_p9)
}
  0x19   :  { %s1011_s25 = smov 64   ;;  %s1012_s26 = smov 4  }
  0x1a   :  { %24 = dma.hbm_to_vmem [thread:$0]  %s1147_s0, 1024, %s19_s23, [#allocation4], %s1011_s25, %s1011_s25, %s1012_s26  }
  0x1b   :  { %s1013_s29 = smov [#allocation8]   ;;  %s1014_s5 = smov [#allocation9]  }
  0x1c   :  { %s42_s30 = sshll.u32 %s1013_s29, 4  ;;  %s55_s1 = sshll.u32 %s1014_s5, 4  ;;  %s43_s30 = int_to_ptr.vmem [resolvable:$true] %s42_s30  ;;  %s56_s1 = int_to_ptr.vmem [resolvable:$true] %s55_s1 }
  0x1d   :  { %s947_s6 = scalar_lea.vmem %s43_s30, 2048  ;;  %p952_p11 = scmp.lt.s32.totalorder %s43_s30, %s43_s30 }
  0x1e   :  { %p948_p10 = scmp.ne.s32.totalorder %s43_s30, %s947_s6  ;;  %p953_p12 = scmp.lt.s32.totalorder %s947_s6, %s947_s6 }
  0x20   :  { %p954_p13 = por %p953_p12, %p952_p11 }
  0x22   :  { %p955_p0 = pnand %p954_p13, %p948_p10 }
  0x24   :  { %958 = shalt.err (!%p955_p0)
}
  0x25   :  { %48 = dma.hbm_to_vmem [thread:$0]  %s1149_s2, 2048, %s43_s30, [#allocation7], %s1008_s18, %s1008_s18, %s1009_s19  }
  0x26   :  { %s967_s0 = scalar_lea.vmem %s56_s1, 128  ;;  %p972_p2 = scmp.lt.s32.totalorder %s56_s1, %s56_s1 }
  0x27   :  { %p968_p1 = scmp.ne.s32.totalorder %s56_s1, %s967_s0  ;;  %p973_p3 = scmp.lt.s32.totalorder %s967_s0, %s967_s0 }
  0x29   :  { %p974_p4 = por %p973_p3, %p972_p2 }
  0x2b   :  { %p975_p5 = pnand %p974_p4, %p968_p1 }
  0x2d   :  { %978 = shalt.err (!%p975_p5)
}
  0x2e   :  { %58 = dma.hbm_to_vmem [thread:$0]  %s1150_s3, 128, %s56_s1, [#allocation10]  }
  0x2f   :  { %999 = dma.done.wait [#allocation4], 1024  }
  0x30   :  { %1000 = vsyncadd [#allocation4], 4294966272 }
  0x31   :  { %1001 = dma.done.wait [#allocation7], 4096  }
  0x32   :  { %1002 = vsyncadd [#allocation7], 4294963200 }
  0x33   :  { %1003 = dma.done.wait [#allocation10], 128  }
  0x34   :  { %1004 = vsyncadd [#allocation10], 4294967168  ;;  %v138_v0 = vld [vmem:[#allocation6 + $0x70] sm:$0xff]  ;;  %v139_v1 = vld [vmem:[#allocation6 + $0x78] sm:$0xff]  ;;  %s1015_s2 = smov [#allocation11]  }
  0x35   :  { %v136_v2 = vld [vmem:[#allocation6 + $0x60] sm:$0xff]  ;;  %v147_v3 = vpack.c.bf16 %v139_v1, %v138_v0  ;;  %v137_v4 = vld [vmem:[#allocation6 + $0x68] sm:$0xff]  ;;  %v134_v6 = vld [vmem:[#allocation6 + $0x50] sm:$0xff]  ;;  %s643_s3 = sshll.u32 %s1015_s2, 4  ;;  %s644_s3 = int_to_ptr.vmem [resolvable:$true] %s643_s3 }
  0x36   :  { %v146_v5 = vpack.c.bf16 %v137_v4, %v136_v2  ;;  %v135_v7 = vld [vmem:[#allocation6 + $0x58] sm:$0xff]  ;;  %v132_v8 = vld [vmem:[#allocation6 + $0x40] sm:$0xff]  ;;  %v133_v10 = vld [vmem:[#allocation6 + $0x48] sm:$0xff]  ;;  %s979_s11 = scalar_lea.vmem %s644_s3, 2048  ;;  %p984_p7 = scmp.lt.s32.totalorder %s644_s3, %s644_s3 }
  0x37   :  { %730 = vmatprep.subr.bf16.mxu0 %v147_v3  ;;  %v145_v9 = vpack.c.bf16 %v135_v7, %v134_v6  ;;  %v827_v11 = vld [vmem:[#allocation3] sm:$0xff]   ;;  %v144_v12 = vpack.c.bf16 %v133_v10, %v132_v8  ;;  %v130_v13 = vld [vmem:[#allocation6 + $0x30] sm:$0xff]  ;;  %v131_v14 = vld [vmem:[#allocation6 + $0x38] sm:$0xff]  ;;  %p980_p6 = scmp.ne.s32.totalorder %s644_s3, %s979_s11  ;;  %p985_p8 = scmp.lt.s32.totalorder %s979_s11, %s979_s11 }
  0x38   :  { %731 = vmatpush3.bf16.msra.mxu0 %v147_v3  ;;  %746 = vmatprep.mubr.bf16.mxu0 %v827_v11  ;;  %v143_v15 = vpack.c.bf16 %v131_v14, %v130_v13  ;;  %v359_v16 = vld [vmem:[#allocation8 + $0x78] sm:$0xff]  ;;  %v358_v17 = vld [vmem:[#allocation8 + $0x70] sm:$0xff]  ;;  %v128_v18 = vld [vmem:[#allocation6 + $0x20] sm:$0xff] }
  0x39   :  { %732 = vmatprep.subr.bf16.mxu0 %v146_v5  ;;  %v129_v19 = vld [vmem:[#allocation6 + $0x28] sm:$0xff]  ;;  %762 = vmatprep.subr.mxu1 %v359_v16  ;;  %v356_v22 = vld [vmem:[#allocation8 + $0x60] sm:$0xff]  ;;  %v126_v23 = vld [vmem:[#allocation6 + $0x10] sm:$0xff]  ;;  %p986_p9 = por %p985_p8, %p984_p7 }
  0x3a   :  { %763 = vmatpush3.msra.mxu1 %v359_v16  ;;  %v357_v20 = vld [vmem:[#allocation8 + $0x68] sm:$0xff]  ;;  %v142_v21 = vpack.c.bf16 %v129_v19, %v128_v18  ;;  %v127_v24 = vld [vmem:[#allocation6 + $0x18] sm:$0xff]  ;;  %v354_v27 = vld [vmem:[#allocation8 + $0x50] sm:$0xff] }
  0x3b   :  { %764 = vmatprep.subr.mxu1 %v358_v17  ;;  %v355_v25 = vld [vmem:[#allocation8 + $0x58] sm:$0xff]  ;;  %v141_v26 = vpack.c.bf16 %v127_v24, %v126_v23  ;;  %v124_v28 = vld [vmem:[#allocation6] sm:$0xff]  ;;  %v125_v29 = vld [vmem:[#allocation6 + $0x8] sm:$0xff]  ;;  %p987_p10 = pnand %p986_p9, %p980_p6 }
  0x3c   :  { %733 = vmatpush3.bf16.msra.mxu0 %v146_v5  ;;  %765 = vmatpush3.msra.mxu1 %v358_v17  ;;  %v353_v30 = vld [vmem:[#allocation8 + $0x48] sm:$0xff]  ;;  %v140_v31 = vpack.c.bf16 %v125_v29, %v124_v28  ;;  %v352_v32 = vld [vmem:[#allocation8 + $0x40] sm:$0xff]  ;;  %v351_v33 = vld [vmem:[#allocation8 + $0x38] sm:$0xff] }
  0x3d   :  { %734 = vmatprep.subr.bf16.mxu0 %v145_v9  ;;  %766 = vmatprep.subr.mxu1 %v357_v20  ;;  %v350_v34 = vld [vmem:[#allocation8 + $0x30] sm:$0xff]  ;;  %v828_v35 = vld [vmem:[#allocation3 + $0x8] sm:$0xff]   ;;  %v348_v38 = vld [vmem:[#allocation8 + $0x20] sm:$0xff] }
  0x3e   :  { %767 = vmatpush3.msra.mxu1 %v357_v20  ;;  %v349_v36 = vld [vmem:[#allocation8 + $0x28] sm:$0xff]  ;;  %v829_v37 = vld [vmem:[#allocation3 + $0x10] sm:$0xff]   ;;  %v347_v39 = vld [vmem:[#allocation8 + $0x18] sm:$0xff] }
  0x3f   :  { %768 = vmatprep.subr.mxu1 %v356_v22  ;;  %v830_v40 = vld [vmem:[#allocation3 + $0x18] sm:$0xff]   ;;  %v831_v41 = vld [vmem:[#allocation3 + $0x20] sm:$0xff]   ;;  %v832_v42 = vld [vmem:[#allocation3 + $0x28] sm:$0xff]  }
  0x40   :  { %735 = vmatpush3.bf16.msra.mxu0 %v145_v9  ;;  %769 = vmatpush3.msra.mxu1 %v356_v22  ;;  %v833_v43 = vld [vmem:[#allocation3 + $0x30] sm:$0xff]   ;;  %v834_v44 = vld [vmem:[#allocation3 + $0x38] sm:$0xff]   ;;  %v345_v46 = vld [vmem:[#allocation8 + $0x8] sm:$0xff] }
  0x41   :  { %736 = vmatprep.subr.bf16.mxu0 %v144_v12  ;;  %770 = vmatprep.subr.mxu1 %v355_v25  ;;  %v346_v45 = vld [vmem:[#allocation8 + $0x10] sm:$0xff]  ;;  %v344_v47 = vld [vmem:[#allocation8] sm:$0xff] }
  0x42   :  { %771 = vmatpush3.msra.mxu1 %v355_v25  ;;  %v1059_v0 = vld [vmem:[#allocation9] ss:$0 sm:$0xff] }
  0x43   :  { %772 = vmatprep.subr.mxu1 %v354_v27 }
  0x44   :  { %737 = vmatpush3.bf16.msra.mxu0 %v144_v12  ;;  %773 = vmatpush3.msra.mxu1 %v354_v27 }
  0x45   :  { %738 = vmatprep.subr.bf16.mxu0 %v143_v15  ;;  %774 = vmatprep.subr.mxu1 %v353_v30 }
  0x46   :  { %775 = vmatpush3.msra.mxu1 %v353_v30 }
  0x47   :  { %776 = vmatprep.subr.mxu1 %v352_v32 }
  0x48   :  { %739 = vmatpush3.bf16.msra.mxu0 %v143_v15  ;;  %777 = vmatpush3.msra.mxu1 %v352_v32 }
  0x49   :  { %740 = vmatprep.subr.bf16.mxu0 %v142_v21  ;;  %778 = vmatprep.subr.mxu1 %v351_v33 }
  0x4a   :  { %779 = vmatpush3.msra.mxu1 %v351_v33 }
  0x4b   :  { %780 = vmatprep.subr.mxu1 %v350_v34 }
  0x4c   :  { %741 = vmatpush3.bf16.msra.mxu0 %v142_v21  ;;  %781 = vmatpush3.msra.mxu1 %v350_v34 }
  0x4d   :  { %742 = vmatprep.subr.bf16.mxu0 %v141_v26  ;;  %782 = vmatprep.subr.mxu1 %v349_v36 }
  0x4e   :  { %783 = vmatpush3.msra.mxu1 %v349_v36 }
  0x4f   :  { %784 = vmatprep.subr.mxu1 %v348_v38 }
  0x50   :  { %743 = vmatpush3.bf16.msra.mxu0 %v141_v26  ;;  %785 = vmatpush3.msra.mxu1 %v348_v38 }
  0x51   :  { %744 = vmatprep.subr.bf16.mxu0 %v140_v31  ;;  %786 = vmatprep.subr.mxu1 %v347_v39 }
  0x52   :  { %787 = vmatpush3.msra.mxu1 %v347_v39 }
  0x53   :  { %788 = vmatprep.subr.mxu1 %v346_v45 }
  0x54   :  { %745 = vmatpush3.bf16.msra.mxu0 %v140_v31  ;;  %789 = vmatpush3.msra.mxu1 %v346_v45 }
  0x55   :  { %790 = vmatprep.subr.mxu1 %v345_v46 }
  0x56   :  { %791 = vmatpush3.msra.mxu1 %v345_v46 }
  0x57   :  { %747 = vmatmul.mubr.bf16.vlgmr.msra.gmra.mxu0 %v828_v35  ;;  %792 = vmatprep.subr.mxu1 %v344_v47 }
  0x58   :  { %750 = vmatprep.mubr.bf16.mxu0 %v829_v37  ;;  %793 = vmatpush3.msra.mxu1 %v344_v47 }
  0x5f   :  { %751 = vmatmul.mubr.bf16.gmra.mxu0 %v830_v40 }
  0x60   :  { %754 = vmatprep.mubr.bf16.mxu0 %v831_v41 }
  0x67   :  { %755 = vmatmul.mubr.bf16.gmra.mxu0 %v832_v42 }
  0x68   :  { %758 = vmatprep.mubr.bf16.mxu0 %v833_v43 }
  0x6f   :  { %759 = vmatmul.mubr.bf16.gmra.mxu0 %v834_v44 }
 0x117   :  { %v748_v48 = vpop.f32.mrf.mxu0 }
 0x119   :  { %v230_v49 = vpop.f32.mrf.mxu0 }
 0x11a   :  { %794 = vmatprep.mubr.f32.mxu1 %v230_v49 }
 0x11b   :  { %v749_v50 = vpop.f32.mrf.mxu0 }
 0x11d   :  { %v233_v51 = vpop.f32.mrf.mxu0 }
 0x11e   :  { %795 = vmatmul.mubr.f32.vlgmr.msra.gmra.mxu1 %v233_v51 }
 0x11f   :  { %v752_v52 = vpop.f32.mrf.mxu0  ;;  %797 = vmatprep.mubr.f32.mxu1 %v748_v48 }
 0x121   :  { %v246_v53 = vpop.f32.mrf.mxu0 }
 0x122   :  { %798 = vmatmul.mubr.f32.gmra.mxu1 %v749_v50 }
 0x123   :  { %v753_v54 = vpop.f32.mrf.mxu0  ;;  %800 = vmatprep.mubr.f32.mxu1 %v246_v53 }
 0x125   :  { %v249_v55 = vpop.f32.mrf.mxu0 }
 0x126   :  { %801 = vmatmul.mubr.f32.gmra.mxu1 %v249_v55 }
 0x127   :  { %v756_v56 = vpop.f32.mrf.mxu0  ;;  %803 = vmatprep.mubr.f32.mxu1 %v752_v52 }
 0x129   :  { %v262_v57 = vpop.f32.mrf.mxu0 }
 0x12a   :  { %804 = vmatmul.mubr.f32.gmra.mxu1 %v753_v54 }
 0x12b   :  { %v757_v58 = vpop.f32.mrf.mxu0  ;;  %806 = vmatprep.mubr.f32.mxu1 %v262_v57 }
 0x12d   :  { %v265_v59 = vpop.f32.mrf.mxu0 }
 0x12e   :  { %807 = vmatmul.mubr.f32.gmra.mxu1 %v265_v59 }
 0x12f   :  { %v760_v60 = vpop.f32.mrf.mxu0  ;;  %809 = vmatprep.mubr.f32.mxu1 %v756_v56 }
 0x131   :  { %v278_v61 = vpop.f32.mrf.mxu0 }
 0x132   :  { %810 = vmatmul.mubr.f32.gmra.mxu1 %v757_v58 }
 0x133   :  { %v761_v62 = vpop.f32.mrf.mxu0  ;;  %812 = vmatprep.mubr.f32.mxu1 %v278_v61 }
 0x135   :  { %v281_v63 = vpop.f32.mrf.mxu0 }
 0x136   :  { %813 = vmatmul.mubr.f32.gmra.mxu1 %v281_v63 }
 0x137   :  { %815 = vmatprep.mubr.f32.mxu1 %v760_v60 }
 0x13a   :  { %816 = vmatmul.mubr.f32.gmra.mxu1 %v761_v62 }
 0x1de   :  { %v796_v1 = vpop.f32.mrf.mxu1 }
 0x1df   :  { %v1062_v2 = vadd.f32 %v796_v1, %v1059_v0 }
 0x1e0   :  { %v431_v3 = vpop.f32.mrf.mxu1 }
 0x1e1   :  { %v667_v4 = vmul.f32 -1.442695, %v1062_v2  ;;  %v1066_v5 = vadd.f32 %v1059_v0, %v431_v3 }
 0x1e2   :  { %v799_v6 = vpop.f32.mrf.mxu1 }
 0x1e3   :  { %835 = vpow2.f32 %v667_v4  ;;  %v666_v7 = vmul.f32 -1.442695, %v1066_v5  ;;  %v1070_v8 = vadd.f32 %v799_v6, %v1059_v0 }
 0x1e4   :  { %v441_v9 = vpop.f32.mrf.mxu1 }
 0x1e5   :  { %837 = vpow2.f32 %v666_v7  ;;  %v669_v10 = vmul.f32 -1.442695, %v1070_v8  ;;  %v1074_v11 = vadd.f32 %v1059_v0, %v441_v9 }
 0x1e6   :  { %v802_v12 = vpop.f32.mrf.mxu1 }
 0x1e7   :  { %839 = vpow2.f32 %v669_v10  ;;  %v668_v13 = vmul.f32 -1.442695, %v1074_v11  ;;  %v1078_v14 = vadd.f32 %v802_v12, %v1059_v0 }
 0x1e8   :  { %v451_v15 = vpop.f32.mrf.mxu1 }
 0x1e9   :  { %841 = vpow2.f32 %v668_v13  ;;  %v671_v16 = vmul.f32 -1.442695, %v1078_v14  ;;  %v1082_v17 = vadd.f32 %v1059_v0, %v451_v15 }
 0x1ea   :  { %v805_v18 = vpop.f32.mrf.mxu1 }
 0x1eb   :  { %843 = vpow2.f32 %v671_v16  ;;  %v670_v19 = vmul.f32 -1.442695, %v1082_v17  ;;  %v1086_v20 = vadd.f32 %v805_v18, %v1059_v0 }
 0x1ec   :  { %v461_v21 = vpop.f32.mrf.mxu1 }
 0x1ed   :  { %845 = vpow2.f32 %v670_v19  ;;  %v673_v22 = vmul.f32 -1.442695, %v1086_v20  ;;  %v1090_v23 = vadd.f32 %v1059_v0, %v461_v21 }
 0x1ee   :  { %v808_v24 = vpop.f32.mrf.mxu1 }
 0x1ef   :  { %847 = vpow2.f32 %v673_v22  ;;  %v672_v25 = vmul.f32 -1.442695, %v1090_v23  ;;  %v1094_v26 = vadd.f32 %v808_v24, %v1059_v0 }
 0x1f0   :  { %v836_v27 = vpop.eup %835  ;;  %v471_v28 = vpop.f32.mrf.mxu1 }
 0x1f1   :  { %v559_v29 = vadd.f32 1.0, %v836_v27  ;;  %849 = vpow2.f32 %v672_v25  ;;  %v675_v30 = vmul.f32 -1.442695, %v1094_v26  ;;  %v1098_v31 = vadd.f32 %v1059_v0, %v471_v28 }
 0x1f2   :  { %v838_v32 = vpop.eup %837  ;;  %v811_v33 = vpop.f32.mrf.mxu1 }
 0x1f3   :  { %851 = vrcp.f32 %v559_v29  ;;  %v558_v34 = vadd.f32 1.0, %v838_v32  ;;  %v674_v35 = vmul.f32 -1.442695, %v1098_v31  ;;  %v1102_v36 = vadd.f32 %v811_v33, %v1059_v0 }
 0x1f4   :  { %v840_v37 = vpop.eup %839  ;;  %853 = vpow2.f32 %v675_v30  ;;  %v481_v38 = vpop.f32.mrf.mxu1 }
 0x1f5   :  { %855 = vrcp.f32 %v558_v34  ;;  %v561_v39 = vadd.f32 1.0, %v840_v37  ;;  %v677_v40 = vmul.f32 -1.442695, %v1102_v36  ;;  %v1106_v41 = vadd.f32 %v1059_v0, %v481_v38 }
 0x1f6   :  { %v842_v42 = vpop.eup %841  ;;  %857 = vpow2.f32 %v674_v35  ;;  %v814_v43 = vpop.f32.mrf.mxu1 }
 0x1f7   :  { %859 = vrcp.f32 %v561_v39  ;;  %v560_v44 = vadd.f32 1.0, %v842_v42  ;;  %v676_v45 = vmul.f32 -1.442695, %v1106_v41  ;;  %v1110_v46 = vadd.f32 %v814_v43, %v1059_v0 }
 0x1f8   :  { %v844_v47 = vpop.eup %843  ;;  %861 = vpow2.f32 %v677_v40  ;;  %v491_v48 = vpop.f32.mrf.mxu1 }
 0x1f9   :  { %863 = vrcp.f32 %v560_v44  ;;  %v563_v49 = vadd.f32 1.0, %v844_v47  ;;  %v679_v50 = vmul.f32 -1.442695, %v1110_v46  ;;  %v1114_v51 = vadd.f32 %v1059_v0, %v491_v48 }
 0x1fa   :  { %v846_v52 = vpop.eup %845  ;;  %865 = vpow2.f32 %v676_v45  ;;  %v817_v53 = vpop.f32.mrf.mxu1 }
 0x1fb   :  { %867 = vrcp.f32 %v563_v49  ;;  %v562_v54 = vadd.f32 1.0, %v846_v52  ;;  %v678_v55 = vmul.f32 -1.442695, %v1114_v51  ;;  %v1118_v56 = vadd.f32 %v817_v53, %v1059_v0 }
 0x1fc   :  { %v848_v57 = vpop.eup %847  ;;  %869 = vpow2.f32 %v679_v50  ;;  %v501_v58 = vpop.f32.mrf.mxu1 }
 0x1fd   :  { %871 = vrcp.f32 %v562_v54  ;;  %v565_v59 = vadd.f32 1.0, %v848_v57  ;;  %v681_v60 = vmul.f32 -1.442695, %v1118_v56  ;;  %v1122_v61 = vadd.f32 %v1059_v0, %v501_v58 }
 0x1fe   :  { %v850_v62 = vpop.eup %849  ;;  %873 = vpow2.f32 %v678_v55 }
 0x1ff   :  { %875 = vrcp.f32 %v565_v59  ;;  %v564_v63 = vadd.f32 1.0, %v850_v62  ;;  %v680_v1 = vmul.f32 -1.442695, %v1122_v61 }
 0x200   :  { %v852_v3 = vpop.eup %851  ;;  %877 = vpow2.f32 %v681_v60 }
 0x201   :  { %v854_v4 = vpop.eup %853  ;;  %v607_v6 = vmul.f32 %v852_v3, %v1062_v2  ;;  %879 = vrcp.f32 %v564_v63 }
 0x202   :  { %v856_v7 = vpop.eup %855  ;;  %v567_v9 = vadd.f32 1.0, %v854_v4  ;;  %881 = vpow2.f32 %v680_v1 }
 0x203   :  { %v858_v10 = vpop.eup %857  ;;  %623 = vst [vmem:[#allocation11 + $0x8] sm:$0xff] %v607_v6  ;;  %v606_v0 = vmul.f32 %v856_v7, %v1066_v5 }
 0x204   :  { %v860_v12 = vpop.eup %859  ;;  %883 = vrcp.f32 %v567_v9  ;;  %v566_v13 = vadd.f32 1.0, %v858_v10 }
 0x205   :  { %v862_v15 = vpop.eup %861  ;;  %622 = vst [vmem:[#allocation11] sm:$0xff] %v606_v0  ;;  %v609_v16 = vmul.f32 %v860_v12, %v1070_v8 }
 0x206   :  { %v864_v18 = vpop.eup %863  ;;  %885 = vrcp.f32 %v566_v13  ;;  %v569_v19 = vadd.f32 1.0, %v862_v15 }
 0x207   :  { %v866_v21 = vpop.eup %865  ;;  %625 = vst [vmem:[#allocation11 + $0x18] sm:$0xff] %v609_v16  ;;  %v608_v2 = vmul.f32 %v864_v18, %v1074_v11 }
 0x208   :  { %v868_v22 = vpop.eup %867  ;;  %887 = vrcp.f32 %v569_v19  ;;  %v568_v24 = vadd.f32 1.0, %v866_v21 }
 0x209   :  { %v870_v25 = vpop.eup %869  ;;  %624 = vst [vmem:[#allocation11 + $0x10] sm:$0xff] %v608_v2  ;;  %v611_v5 = vmul.f32 %v868_v22, %v1078_v14 }
 0x20a   :  { %v872_v27 = vpop.eup %871  ;;  %889 = vrcp.f32 %v568_v24  ;;  %v571_v28 = vadd.f32 1.0, %v870_v25 }
 0x20b   :  { %v874_v29 = vpop.eup %873  ;;  %627 = vst [vmem:[#allocation11 + $0x28] sm:$0xff] %v611_v5  ;;  %v610_v8 = vmul.f32 %v872_v27, %v1082_v17 }
 0x20c   :  { %v876_v30 = vpop.eup %875  ;;  %891 = vrcp.f32 %v571_v28  ;;  %v570_v32 = vadd.f32 1.0, %v874_v29 }
 0x20d   :  { %v878_v33 = vpop.eup %877  ;;  %626 = vst [vmem:[#allocation11 + $0x20] sm:$0xff] %v610_v8  ;;  %v613_v11 = vmul.f32 %v876_v30, %v1086_v20 }
 0x20e   :  { %v880_v34 = vpop.eup %879  ;;  %893 = vrcp.f32 %v570_v32  ;;  %v573_v35 = vadd.f32 1.0, %v878_v33 }
 0x20f   :  { %v882_v37 = vpop.eup %881  ;;  %629 = vst [vmem:[#allocation11 + $0x38] sm:$0xff] %v613_v11  ;;  %v612_v14 = vmul.f32 %v880_v34, %v1090_v23 }
 0x210   :  { %895 = vrcp.f32 %v573_v35  ;;  %v572_v38 = vadd.f32 1.0, %v882_v37 }
 0x211   :  { %v884_v39 = vpop.eup %883  ;;  %628 = vst [vmem:[#allocation11 + $0x30] sm:$0xff] %v612_v14 }
 0x212   :  { %v615_v17 = vmul.f32 %v884_v39, %v1094_v26  ;;  %897 = vrcp.f32 %v572_v38 }
 0x213   :  { %v886_v40 = vpop.eup %885 }
 0x214   :  { %631 = vst [vmem:[#allocation11 + $0x48] sm:$0xff] %v615_v17  ;;  %v614_v42 = vmul.f32 %v886_v40, %v1098_v31 }
 0x215   :  { %v888_v43 = vpop.eup %887 }
 0x216   :  { %630 = vst [vmem:[#allocation11 + $0x40] sm:$0xff] %v614_v42  ;;  %v617_v20 = vmul.f32 %v888_v43, %v1102_v36 }
 0x217   :  { %v890_v44 = vpop.eup %889 }
 0x218   :  { %633 = vst [vmem:[#allocation11 + $0x58] sm:$0xff] %v617_v20  ;;  %v616_v45 = vmul.f32 %v890_v44, %v1106_v41 }
 0x219   :  { %v892_v23 = vpop.eup %891 }
 0x21a   :  { %632 = vst [vmem:[#allocation11 + $0x50] sm:$0xff] %v616_v45  ;;  %v619_v47 = vmul.f32 %v892_v23, %v1110_v46 }
 0x21b   :  { %v894_v48 = vpop.eup %893 }
 0x21c   :  { %635 = vst [vmem:[#allocation11 + $0x68] sm:$0xff] %v619_v47  ;;  %v618_v26 = vmul.f32 %v894_v48, %v1114_v51 }
 0x21d   :  { %v896_v49 = vpop.eup %895 }
 0x21e   :  { %634 = vst [vmem:[#allocation11 + $0x60] sm:$0xff] %v618_v26  ;;  %v621_v31 = vmul.f32 %v896_v49, %v1118_v56 }
 0x21f   :  { %v898_v50 = vpop.eup %897 }
 0x220   :  { %637 = vst [vmem:[#allocation11 + $0x78] sm:$0xff] %v621_v31  ;;  %v620_v36 = vmul.f32 %v898_v50, %v1122_v61 }
 0x222   :  { %636 = vst [vmem:[#allocation11 + $0x70] sm:$0xff] %v620_v36 }
 0x223   :  { %990 = shalt.err (!%p987_p10)
}
 0x224   :  { %649 = dma.vmem_to_hbm [thread:$0]  %s644_s3, 2048, %s1151_s4, [#allocation5], %s1008_s18, %s1008_s18, %s1009_s19  }
 0x225   :  { %1005 = dma.done.wait [#allocation5], 2048  }
 0x226   :  { %1006 = vsyncadd [#allocation5], 4294965248 }
 0x227   :  { %653 = vsyncpa [#allocation4], 1 }
 0x228   :  { %654 = vsyncpa [#allocation7], 1 }
 0x229   :  { %655 = vsyncpa [#allocation10], 1 }
 0x22a   :  { %656 = vsyncpa [#allocation5], 1 }

</bundles_post_ra>
